<compile_context>
chip_gen: v5e
topology: v5e:2x2
jax: 0.10.0
libtpu: 0.0.40
codegen_flags: <defaults>
</compile_context>

<pallas_src>
import numpy as np
import jax
import jax.numpy as jnp
from jax.experimental import pallas as pl
from jax.experimental.pallas import tpu as pltpu

LANE = 128
SUBLANE = 8
MAX_TILE_ROWS = 4096          # 4096*128*4B = 2 MiB per block


# ----------------------------- Pallas kernel --------------------------------

def _ema_kernel(omd_ref, shadow_ref, param_ref, out_ref):
    # omd_ref: (1,) f32 in SMEM holding one_minus_decay (precomputed on host).
    omd = omd_ref[0]
    s = shadow_ref[...]
    out_ref[...] = s - omd * (s - param_ref[...])


def ema_update_flat(shadow_flat, param_flat, one_minus_decay, block_rows):
    """EMA update on the flat (rows, 128) f32 buffers. shadow is aliased to out."""
    rows, lanes = shadow_flat.shape
    assert lanes == LANE and rows % block_rows == 0
    grid = (rows // block_rows,)
    omd_arr = jnp.reshape(one_minus_decay.astype(jnp.float32), (1,))

    return pl.pallas_call(
        _ema_kernel,
        out_shape=jax.ShapeDtypeStruct((rows, LANE), jnp.float32),
        grid=grid,
        in_specs=[
            pl.BlockSpec(memory_space=pltpu.MemorySpace.SMEM),       # one_minus_decay
            pl.BlockSpec((block_rows, LANE), lambda i: (i, 0)),      # shadow
            pl.BlockSpec((block_rows, LANE), lambda i: (i, 0)),      # param
        ],
        out_specs=pl.BlockSpec((block_rows, LANE), lambda i: (i, 0)),
        input_output_aliases={1: 0},                                 # shadow -> out
        compiler_params=pltpu.CompilerParams(
            dimension_semantics=("parallel",),
            vmem_limit_bytes=32 * 1024 * 1024),
    )(omd_arr, shadow_flat, param_flat)


# --------------------- packing glue (flat (rows,128) layout) ----------------

def _round_up(x, m):
    return -(-x // m) * m


def _choose_block_rows(rows8):
    """Pick block rows: big blocks (<=2 MiB), but keep grid >= 2 when possible."""
    if rows8 <= 2 * SUBLANE:
        return rows8
    half = max(SUBLANE, (rows8 // 2 // SUBLANE) * SUBLANE)
    return min(MAX_TILE_ROWS, half)


def _param_meta(params):
    leaves, treedef = jax.tree_util.tree_flatten(params)
    shapes = [l.shape for l in leaves]
    sizes = [int(np.prod(s)) for s in shapes]
    total = int(sum(sizes))
    rows_needed = max(1, -(-total // LANE))
    rows8 = _round_up(rows_needed, SUBLANE)
    block_rows = _choose_block_rows(rows8)
    rows = _round_up(rows8, block_rows)
    return dict(treedef=treedef, shapes=shapes, sizes=sizes, total=total,
                block_rows=block_rows, rows=rows)


def _pack_leaves(leaves, meta):
    """Concat + pad flattened leaves into the (rows, 128) f32 layout."""
    flat = jnp.concatenate(
        [jnp.reshape(l, (-1,)).astype(jnp.float32) for l in leaves])
    flat = jnp.pad(flat, (0, meta["rows"] * LANE - meta["total"]))
    return flat.reshape(meta["rows"], LANE)


def _unpack(flat2d, meta):
    flat = flat2d.reshape(-1)[: meta["total"]]
    leaves, off = [], 0
    for shp, sz in zip(meta["shapes"], meta["sizes"]):
        leaves.append(flat[off:off + sz].reshape(shp))
        off += sz
    return jax.tree_util.tree_unflatten(meta["treedef"], leaves)


# ------------------------------- LitEma port ---------------------------------

class LitEmaJax:
    """JAX/Pallas port of LitEma's forward (EMA shadow-buffer update)."""

    def __init__(self, params, decay=0.9999, use_num_updates=True):
        if decay < 0.0 or decay > 1.0:
            raise ValueError("Decay must be between 0 and 1")
        self.decay = float(decay)
        self.num_updates = 0 if use_num_updates else -1
        self.meta = _param_meta(params)
        leaves = jax.tree_util.tree_leaves(params)
        self.shadow_flat = _pack_leaves(leaves, self.meta)

        meta = self.meta
        block_rows = meta["block_rows"]

        def _update(shadow_flat, leaves, one_minus_decay):
            param_flat = _pack_leaves(leaves, meta)
            return ema_update_flat(shadow_flat, param_flat,
                                   one_minus_decay, block_rows)

        # Donate the shadow buffer so the aliased output reuses its HBM.
        self._update = jax.jit(_update, donate_argnums=(0,))

    def __call__(self, params):
        # Host-side decay schedule (mirrors PyTorch: increment first, then min).
        decay = self.decay
        if self.num_updates >= 0:
            self.num_updates += 1
            decay = min(self.decay,
                        (1.0 + self.num_updates) / (10.0 + self.num_updates))
        one_minus_decay = jnp.float32(1.0 - decay)     # traced arg: no recompiles

        leaves, treedef = jax.tree_util.tree_flatten(params)
        assert treedef == self.meta["treedef"], "parameter structure changed"
        self.shadow_flat = self._update(self.shadow_flat, leaves, one_minus_decay)

    def shadow_params(self):
        """Return the EMA shadow parameters in the original pytree structure."""
        return _unpack(self.shadow_flat, self.meta)

    def reset_num_updates(self):
        self.num_updates = 0


# ---------------------------------- main -------------------------------------

if __name__ == "__main__":
    key = jax.random.PRNGKey(0)
    k1, k2, k3, k4, k5, k6 = jax.random.split(key, 6)

    # Synthetic "model" parameters: small conv + linear.
    init_params = {
        "convweight": jax.random.normal(k1, (4, 4, 3, 3), jnp.float32),  # OIHW
        "convbias": jax.random.normal(k2, (4,), jnp.float32),
        "linweight": jax.random.normal(k3, (32, 16), jnp.float32),
        "linbias": jax.random.normal(k4, (32,), jnp.float32),
    }

    ema = LitEmaJax(init_params, decay=0.9999, use_num_updates=True)

    def perturb(params, k):
        ks = list(jax.random.split(k, len(jax.tree_util.tree_leaves(params))))
        leaves, treedef = jax.tree_util.tree_flatten(params)
        new_leaves = [p + 0.01 * jax.random.normal(kk, p.shape, p.dtype)
                      for p, kk in zip(leaves, ks)]
        return jax.tree_util.tree_unflatten(treedef, new_leaves)

    step1_params = perturb(init_params, k5)
    step2_params = perturb(step1_params, k6)

    # Two EMA forward passes (Pallas kernel does the elementwise update).
    ema(step1_params)
    ema(step2_params)
    shadow_after = ema.shadow_params()
    jax.block_until_ready(jax.tree_util.tree_leaves(shadow_after))

    # Pure-JAX reference: same two-step schedule.
    ref = init_params
    n = 0
    for step_params in (step1_params, step2_params):
        n += 1
        d = min(0.9999, (1.0 + n) / (10.0 + n))
        omd = 1.0 - d
        ref = jax.tree_util.tree_map(lambda s, p: s - omd * (s - p),
                                     ref, step_params)

    for kname in init_params:
        np.testing.assert_allclose(
            np.asarray(shadow_after[kname]), np.asarray(ref[kname]),
            rtol=1e-6, atol=1e-6)

    print("KERNEL_OK")
</pallas_src>

<mosaic_0001>
module attributes {stable_mosaic.version = 11 : i64} {
  func.func @_ema_kernel(%arg0: i32, %arg1: memref<1xf32, #tpu.memory_space<smem>>, %arg2: memref<8x128xf32, #tpu.memory_space<vmem>>, %arg3: memref<8x128xf32, #tpu.memory_space<vmem>>, %arg4: memref<8x128xf32, #tpu.memory_space<vmem>>) attributes {dimension_semantics = [#tpu.dimension_semantics<parallel>], iteration_bounds = array<i64: 1>, scalar_prefetch = 0 : i64, scratch_operands = 0 : i64, tpu.core_type = #tpu.core_type<tc>, window_params = [{transform_indices = @transform_0, window_bounds = array<i64: 1>}, {transform_indices = @transform_1, window_bounds = array<i64: 8, 128>}, {transform_indices = @transform_2, window_bounds = array<i64: 8, 128>}, {transform_indices = @transform_3, window_bounds = array<i64: 8, 128>}]} {
    %c0 = arith.constant 0 : index
    %0 = memref.load %arg1[%c0] : memref<1xf32, #tpu.memory_space<smem>>
    %c0_0 = arith.constant 0 : index
    %c0_1 = arith.constant 0 : index
    %1 = vector.load %arg2[%c0_0, %c0_1] : memref<8x128xf32, #tpu.memory_space<vmem>>, vector<8x128xf32>
    %c0_2 = arith.constant 0 : index
    %c0_3 = arith.constant 0 : index
    %2 = vector.load %arg3[%c0_2, %c0_3] : memref<8x128xf32, #tpu.memory_space<vmem>>, vector<8x128xf32>
    %3 = arith.subf %1, %2 : vector<8x128xf32>
    %4 = vector.broadcast %0 : f32 to vector<8x128xf32>
    %5 = arith.mulf %4, %3 : vector<8x128xf32>
    %6 = arith.subf %1, %5 : vector<8x128xf32>
    %c0_4 = arith.constant 0 : index
    %c0_5 = arith.constant 0 : index
    %7 = vector.load %arg4[%c0_4, %c0_5] : memref<8x128xf32, #tpu.memory_space<vmem>>, vector<8x128xf32>
    tpu.vector_store %arg4[%c0_4, %c0_5], %6 {strides = array<i32>} : memref<8x128xf32, #tpu.memory_space<vmem>>, vector<8x128xf32>,
    return
  }
  func.func @transform_0(%arg0: i32) -> i32 {
    %c0_i32 = arith.constant 0 : i32
    %c0_i32_0 = arith.constant 0 : i32
    return %c0_i32 : i32
  }
  func.func @transform_1(%arg0: i32) -> (i32, i32) {
    %c0_i32 = arith.constant 0 : i32
    %c0_i32_0 = arith.constant 0 : i32
    return %arg0, %c0_i32 : i32, i32
  }
  func.func @transform_2(%arg0: i32) -> (i32, i32) {
    %c0_i32 = arith.constant 0 : i32
    %c0_i32_0 = arith.constant 0 : i32
    return %arg0, %c0_i32 : i32, i32
  }
  func.func @transform_3(%arg0: i32) -> (i32, i32) {
    %c0_i32 = arith.constant 0 : i32
    %c0_i32_0 = arith.constant 0 : i32
    return %arg0, %c0_i32 : i32, i32
  }
}

</mosaic_0001>

<bundles_post_ra>
// kernel: _update.1
= control target key start
LH: loop header
LB: loop body
LE: loop exit
PB: predicated region body
PF: predicated region fallthrough
CT: control target
= control target key end

     0   :  { %9 = vsyncpa [#allocation4], 0  ;;  %s143_s0 = inlined_call_operand.<no memory space> [shape: f32[1], index: 0, kind: input, shape index: {}]   ;;  %s144_s1 = inlined_call_operand.hbm [shape: f32[8,128], index: 1, kind: input, shape index: {}, may-alias: {1,3}]   ;;  %s145_s2 = inlined_call_operand.vmem [shape: f32[8,128], index: 2, kind: input, shape index: {}]   ;;  %s146_s3 = inlined_call_operand.hbm [shape: f32[8,128], index: 3, kind: output, shape index: {}, may-alias: {1,3}]  }
   0x1   :  { %10 = vsyncpa [#allocation5], 0  ;;  %s18_s14 = sshll.u32 %s144_s1, 4  ;;  %s109_s15 = smov [#allocation3]   ;;  %s19_s14 = int_to_ptr.hbm [resolvable:$true] %s18_s14 }
   0x2   :  { %s20_s16 = sshll.u32 %s109_s15, 4  ;;  %s21_s16 = int_to_ptr.vmem [resolvable:$true] %s20_s16 }
   0x3   :  { %23 = dma.hbm_to_vmem [thread:$0]  %s19_s14, 128, %s21_s16, [#allocation4]  }
   0x4   :  { %105 = dma.done.wait [#allocation4], 128  }
   0x5   :  { %106 = vsyncadd [#allocation4], 4294967168  ;;  %v31_v0 = vld [vmem:[#allocation3] sm:$0xff]  ;;  %v34_v2 = vstv %s143_s0  ;;  %s110_s21 = smov [#allocation6]   ;;  %s45_s24 = sshll.u32 %s146_s3, 4  ;;  %s46_s24 = int_to_ptr.hbm [resolvable:$true] %s45_s24 }
   0x6   :  { %v32_v1 = vld [vmem:[%s145_s2] sm:$0xff]  ;;  %s43_s22 = sshll.u32 %s110_s21, 4  ;;  %s44_s22 = int_to_ptr.vmem [resolvable:$true] %s43_s22 }
   0x7   :  { %v33_v3 = vsub.f32 %v31_v0, %v32_v1 }
   0x9   :  { %v35_v4 = vmul.f32 %v34_v2, %v33_v3 }
   0xb   :  { %v36_v5 = vsub.f32 %v31_v0, %v35_v4 }
   0xd   :  { %37 = vst [vmem:[#allocation6] sm:$0xff] %v36_v5 }
   0xe   :  { %48 = dma.vmem_to_hbm [thread:$0]  %s44_s22, 128, %s46_s24, [#allocation5]  }
   0xf   :  { %107 = dma.done.wait [#allocation5], 128  }
  0x10   :  { %108 = vsyncadd [#allocation5], 4294967168 }
  0x11   :  { %53 = vsyncpa [#allocation4], 1 }
  0x12   :  { %54 = vsyncpa [#allocation5], 1 }

</bundles_post_ra>
